<compile_context>
chip_gen: v5e
topology: v5e:2x2
jax: 0.10.0
libtpu: 0.0.40
codegen_flags: <defaults>
</compile_context>

<pallas_src>
import functools

import jax
import jax.numpy as jnp
from jax import lax
from jax.experimental import pallas as pl
from jax.experimental.pallas import tpu as pltpu

_OFFSETS = tuple((dh, dw) for dh in (-1, 0, 1) for dw in (-1, 0, 1))  # kh*3+kw order


# ---------------------------------------------------------------------------
# Roll-direction probe (cached; robust to pltpu.roll's sign convention)
# ---------------------------------------------------------------------------

@functools.lru_cache(maxsize=None)
def _roll_sign():
    """Returns s such that pltpu.roll(h, (s*d) % Q, axis=1)[q] == h[(q + d) % Q]."""
    def probe(x_ref, o_ref):
        o_ref[:, :] = pltpu.roll(x_ref[:, :], 1, axis=1)

    x = jnp.tile(jnp.arange(128, dtype=jnp.float32)[None, :], (8, 1))
    y = pl.pallas_call(probe, out_shape=jax.ShapeDtypeStruct((8, 128), jnp.float32))(x)
    # np.roll convention: roll(x, 1)[0] == x[-1] == 127  -> need shift = -delta.
    return -1 if float(y[0, 0]) == 127.0 else 1


# ---------------------------------------------------------------------------
# Fused full-depth kernel
# ---------------------------------------------------------------------------

def _make_fused_kernel(meta, roll_sign):
    """meta: per-block dicts with has_skip, stride, Cp_in, Cp_out, Q_in, W_in, Q_out, W_out."""
    stride0 = meta[0]["stride"]
    n_params = [10 if m["has_skip"] else 8 for m in meta]

    def kernel(*refs):
        pos = 0
        x_ref = refs[pos]; pos += 1
        block_prefs = []
        for n in n_params:
            block_prefs.append(refs[pos:pos + n]); pos += n
        mask_in_ref = refs[pos]; mask_out_ref = refs[pos + 1]; pos += 2
        sel_ref = None
        if stride0 != 1:
            sel_ref = refs[pos]; pos += 1
        o_ref = refs[pos]

        def taps_bf16(h, mref, Q, W):
            """(C, Q) f32 -> (9*C, Q) bf16 tap matrix, built in vregs (no scratch).

            Taps are lane rolls (XLU) with f32 border masks (also kill row /
            batch wrap-around), concatenated along the 8-aligned sublane axis
            and cast to bf16 once for the MXU.
            """
            parts = []
            for t, (dh, dw) in enumerate(_OFFSETS):
                delta = dh * W + dw
                r = h if delta == 0 else pltpu.roll(h, (roll_sign * delta) % Q, axis=1)
                parts.append(r * mref[t:t + 1, :])
            return jnp.concatenate(parts, axis=0).astype(jnp.bfloat16)

        h = x_ref[:, :].astype(jnp.float32)                       # (Cp0, Q0)
        for bi, m in enumerate(meta):
            prefs = block_prefs[bi]
            if m["has_skip"]:
                s1, t1, w1, b1, s2, t2, w2, b2, wsk, bsk = prefs
            else:
                s1, t1, w1, b1, s2, t2, w2, b2 = prefs
            mref = mask_in_ref if bi == 0 else mask_out_ref
            Qi, Wi = m["Q_in"], m["W_in"]
            Qo, Wo = m["Q_out"], m["W_out"]
            Co = m["Cp_out"]

            # bn1 (folded eval-mode affine) + relu, f32 on the VPU.
            a1 = jnp.maximum(h * s1[:, :] + t1[:, :], 0.0)
            # conv1: single K=9*Cin bf16 MXU dot, f32 accumulate.
            y1 = jnp.dot(w1[:, :], taps_bf16(a1, mref, Qi, Wi),
                         preferred_element_type=jnp.float32)      # (Co, Qi)
            if m["has_skip"]:
                # skip path: 3x3 conv on the raw block input (PyTorch spec).
                ysk = jnp.dot(wsk[:, :], taps_bf16(h, mref, Qi, Wi),
                              preferred_element_type=jnp.float32)  # (Co, Qi)
            if m["stride"] != 1:
                # Stride-2: pick the needed output columns AFTER the weight
                # dots, once for conv1 + skip stacked -> (2*Co, Qi) x (Qi, Qo).
                stacked = jnp.concatenate([y1, ysk], axis=0).astype(jnp.bfloat16)
                picked = jnp.dot(stacked, sel_ref[:, :],
                                 preferred_element_type=jnp.float32)  # (2*Co, Qo)
                y1, ysk = picked[:Co, :], picked[Co:, :]
            y1 = y1 + b1[:, :]
            sk = (ysk + bsk[:, :]) if m["has_skip"] else h
            # dropout: identity (eval / p == 0).
            # bn2 + relu, then conv2 (stride 1 at output resolution).
            a2 = jnp.maximum(y1 * s2[:, :] + t2[:, :], 0.0)
            y2 = jnp.dot(w2[:, :], taps_bf16(a2, mask_out_ref, Qo, Wo),
                         preferred_element_type=jnp.float32) + b2[:, :]
            h = y2 + sk                                           # (Co, Qo)

        o_ref[:, :] = h.astype(o_ref.dtype)

    return kernel


# ---------------------------------------------------------------------------
# Host-side constant builders (tiny, built once)
# ---------------------------------------------------------------------------

def _round_up(x, m):
    return ((x + m - 1) // m) * m


def _pad_axis(a, axis, new):
    pad = new - a.shape[axis]
    if pad == 0:
        return a
    widths = [(0, 0)] * a.ndim
    widths[axis] = (0, pad)
    return jnp.pad(a, widths)


def _conv_out_size(s, stride):
    # 3x3 conv, padding 1:  out = floor((s - 1)/stride) + 1  (== ceil(s/stride)).
    return (s - 1) // stride + 1


def _tap_masks(N, H, W):
    """(9, N*H*W) f32 validity masks: zero where a 3x3 neighbor is out of bounds
    (also kills wrap-around across rows and across batch samples)."""
    P = H * W
    idx = jnp.arange(P)
    oh, ow = idx // W, idx % W
    rows = []
    for dh, dw in _OFFSETS:
        v = (oh + dh >= 0) & (oh + dh < H) & (ow + dw >= 0) & (ow + dw < W)
        rows.append(jnp.tile(v, (N,)))
    return jnp.stack(rows).astype(jnp.float32)


def _stride_selection(N, H, W, stride):
    """(N*H*W, N*Ho*Wo) 0/1 bf16 matrix selecting the strided output columns."""
    Ho, Wo = _conv_out_size(H, stride), _conv_out_size(W, stride)
    P, Po = H * W, Ho * Wo
    qo = jnp.arange(N * Po)
    n, r = qo // Po, qo % Po
    src = n * P + (r // Wo) * stride * W + (r % Wo) * stride
    return (jnp.arange(N * P)[:, None] == src[None, :]).astype(jnp.bfloat16)


def _flat_weight(w_hwio, cin_p, cout_p):
    """HWIO (3,3,Cin,Cout) -> zero-padded (Cout_p, 9*Cin_p) bf16, tap-major columns."""
    w = _pad_axis(_pad_axis(w_hwio, 2, cin_p), 3, cout_p)           # (3,3,Cin_p,Cout_p)
    wt = jnp.transpose(w.reshape(9, cin_p, cout_p), (2, 0, 1))      # (Cout_p, 9, Cin_p)
    return wt.reshape(cout_p, 9 * cin_p).astype(jnp.bfloat16)


def _col(v, cp):
    return _pad_axis(v.astype(jnp.float32), 0, cp).reshape(cp, 1)


# ---------------------------------------------------------------------------
# Builder: one fused pallas_call + jitted NCHW wrapper for the whole block stack
# ---------------------------------------------------------------------------

def build_wide_resnet_block(blocks, N, H, W):
    roll_sign = _roll_sign()

    stride0 = blocks[0]["stride"]
    C_in = blocks[0]["conv1"][0].shape[2]
    C_out = blocks[0]["conv1"][0].shape[3]
    Cp_in = _round_up(C_in, 8)     # f32 sublane tile
    Cp_out = _round_up(C_out, 8)
    H1, W1 = _conv_out_size(H, stride0), _conv_out_size(W, stride0)
    Q0, Q1 = N * H * W, N * H1 * W1

    consts, meta = [], []
    for bi, p in enumerate(blocks):
        if bi > 0:
            assert p["stride"] == 1 and p["skip"] is None, \
                "only the first WideDropoutBlock may downsample / change channels"
        cin_p = Cp_in if bi == 0 else Cp_out
        s1, t1 = p["bn1"]
        s2, t2 = p["bn2"]
        w1, b1 = p["conv1"]
        w2, b2 = p["conv2"]
        has_skip = p["skip"] is not None
        consts += [_col(s1, cin_p), _col(t1, cin_p),
                   _flat_weight(w1, cin_p, Cp_out), _col(b1, Cp_out),
                   _col(s2, Cp_out), _col(t2, Cp_out),
                   _flat_weight(w2, Cp_out, Cp_out), _col(b2, Cp_out)]
        if has_skip:
            wsk, bsk = p["skip"]
            consts += [_flat_weight(wsk, cin_p, Cp_out), _col(bsk, Cp_out)]
        meta.append(dict(has_skip=has_skip, stride=p["stride"],
                         Cp_in=cin_p, Cp_out=Cp_out,
                         Q_in=Q0 if bi == 0 else Q1, W_in=W if bi == 0 else W1,
                         Q_out=Q1, W_out=W1))
    consts += [_tap_masks(N, H, W), _tap_masks(N, H1, W1)]
    if stride0 != 1:
        consts += [_stride_selection(N, H, W, stride0)]

    kernel = _make_fused_kernel(meta, roll_sign)

    in_shapes = [(Cp_in, Q0)] + [tuple(c.shape) for c in consts]
    call = pl.pallas_call(
        kernel,
        out_shape=jax.ShapeDtypeStruct((Cp_out, Q1), jnp.float32),
        grid=(1,),
        in_specs=[pl.BlockSpec(s, lambda i: (0, 0)) for s in in_shapes],
        out_specs=pl.BlockSpec((Cp_out, Q1), lambda i: (0, 0)),
        compiler_params=pltpu.CompilerParams(dimension_semantics=("arbitrary",)),
    )
    # TODO(synk): add a "parallel" batch grid axis (v7x megacore) and Q-tiling
    #             once N / channel widths grow beyond the toy size.

    @jax.jit
    def apply(x_nchw):
        n, c, h, w = x_nchw.shape
        xf = jnp.transpose(x_nchw, (1, 0, 2, 3)).reshape(c, n * h * w)
        xf = _pad_axis(xf, 0, Cp_in)
        of = call(xf, *consts)                               # (Cp_out, Q1)
        out = of[:C_out].reshape(C_out, n, H1, W1)
        return jnp.transpose(out, (1, 0, 2, 3))              # NCHW

    return apply


# ---------------------------------------------------------------------------
# Parameter init (deterministic, synthetic; BatchNorm folded to eval-mode affine)
# ---------------------------------------------------------------------------

def init_bn(key, c, eps=1e-5):
    k1, k2, k3, k4 = jax.random.split(key, 4)
    gamma = jax.random.uniform(k1, (c,), jnp.float32, 0.5, 1.5)
    beta = jax.random.normal(k2, (c,), jnp.float32) * 0.1
    mean = jax.random.normal(k3, (c,), jnp.float32) * 0.1
    var = jax.random.uniform(k4, (c,), jnp.float32, 0.5, 1.5)
    scale = gamma / jnp.sqrt(var + eps)
    shift = beta - mean * scale
    return scale, shift


def init_conv(key, cin, cout):
    k1, k2 = jax.random.split(key)
    w = jax.random.normal(k1, (3, 3, cin, cout), jnp.float32) * 0.1   # HWIO
    b = jax.random.normal(k2, (cout,), jnp.float32) * 0.1
    return w, b


def init_wide_dropout_block(key, in_planes, out_planes, down_sample):
    keys = jax.random.split(key, 5)
    stride = 2 if down_sample else 1
    return {
        "bn1": init_bn(keys[0], in_planes),
        "conv1": init_conv(keys[1], in_planes, out_planes),
        "bn2": init_bn(keys[2], out_planes),
        "conv2": init_conv(keys[3], out_planes, out_planes),
        "stride": stride,
        # PyTorch spec: skip is a 3x3 conv (pad=1, block stride) when needed.
        "skip": (init_conv(keys[4], in_planes, out_planes)
                 if (stride != 1 or in_planes != out_planes) else None),
    }


# ---------------------------------------------------------------------------
# Pure-JAX reference (for correctness check)
# ---------------------------------------------------------------------------

def _conv_ref(x, w, b, stride, mxu_dtype):
    out = lax.conv_general_dilated(
        x.astype(mxu_dtype), w.astype(mxu_dtype),
        (stride, stride), ((1, 1), (1, 1)),
        dimension_numbers=("NHWC", "HWIO", "NHWC"),
        preferred_element_type=jnp.float32)
    return out + b.reshape(1, 1, 1, -1)


def _block_ref(x, p, mxu_dtype):
    s1, t1 = p["bn1"]
    h = jnp.maximum(x * s1 + t1, 0.0)
    h = _conv_ref(h, *p["conv1"], p["stride"], mxu_dtype)
    s2, t2 = p["bn2"]
    h = jnp.maximum(h * s2 + t2, 0.0)
    h = _conv_ref(h, *p["conv2"], 1, mxu_dtype)
    sk = _conv_ref(x, *p["skip"], p["stride"], mxu_dtype) if p["skip"] is not None else x
    return h + sk


# ---------------------------------------------------------------------------
# Main
# ---------------------------------------------------------------------------

if __name__ == "__main__":
    key = jax.random.PRNGKey(0)
    kx, kp = jax.random.split(key)

    # WideResNetBlock(in_planes=4, out_planes=8, depth=2, dropout=0.0, down_sample=True)
    N, C_in, H, W = 2, 4, 16, 16
    out_planes, depth = 8, 2

    x_nchw = jax.random.normal(kx, (N, C_in, H, W), jnp.float32)     # PyTorch NCHW input

    bkeys = jax.random.split(kp, depth)
    blocks = [init_wide_dropout_block(bkeys[0], C_in, out_planes, True)]
    for i in range(1, depth):
        blocks.append(init_wide_dropout_block(bkeys[i], out_planes, out_planes, False))

    forward = build_wide_resnet_block(blocks, N, H, W)       # built (and traced) once
    out_nchw = jax.block_until_ready(forward(x_nchw))

    # References: one mirroring the bf16-at-the-MXU math, one pure f32.
    x_nhwc = jnp.transpose(x_nchw, (0, 2, 3, 1))
    ref_bf16 = x_nhwc
    ref_f32 = x_nhwc
    for p in blocks:
        ref_bf16 = _block_ref(ref_bf16, p, jnp.bfloat16)
        ref_f32 = _block_ref(ref_f32, p, jnp.float32)
    ref_bf16 = jnp.transpose(ref_bf16, (0, 3, 1, 2))
    ref_f32 = jnp.transpose(ref_f32, (0, 3, 1, 2))

    assert out_nchw.shape == ref_f32.shape, (out_nchw.shape, ref_f32.shape)
    err16 = float(jnp.max(jnp.abs(out_nchw - ref_bf16)))
    assert jnp.allclose(out_nchw, ref_bf16, rtol=2e-2, atol=2e-2), \
        f"max abs err vs bf16-mirrored reference = {err16}"
    err32 = float(jnp.max(jnp.abs(out_nchw - ref_f32)))
    assert jnp.allclose(out_nchw, ref_f32, rtol=1e-1, atol=1e-1), \
        f"max abs err vs f32 reference = {err32}"

    print("KERNEL_OK")
</pallas_src>

<mosaic_0001>
module attributes {stable_mosaic.version = 11 : i64} {
  func.func @probe(%arg0: memref<8x128xf32, #tpu.memory_space<vmem>>, %arg1: memref<8x128xf32, #tpu.memory_space<vmem>>) attributes {dimension_semantics = [], scalar_prefetch = 0 : i64, scratch_operands = 0 : i64, tpu.core_type = #tpu.core_type<tc>} {
    %c0 = arith.constant 0 : index
    %c0_0 = arith.constant 0 : index
    %0 = vector.load %arg0[%c0, %c0_0] : memref<8x128xf32, #tpu.memory_space<vmem>>, vector<8x128xf32>
    %c1_i32 = arith.constant 1 : i32
    %1 = tpu.dynamic_rotate %0 by %c1_i32 dim 1 : vector<8x128xf32>, i32 -> vector<8x128xf32>
    %c0_1 = arith.constant 0 : index
    %c0_2 = arith.constant 0 : index
    %2 = vector.load %arg1[%c0_1, %c0_2] : memref<8x128xf32, #tpu.memory_space<vmem>>, vector<8x128xf32>
    tpu.vector_store %arg1[%c0_1, %c0_2], %1 {strides = array<i32>} : memref<8x128xf32, #tpu.memory_space<vmem>>, vector<8x128xf32>,
    return
  }
}

</mosaic_0001>

<bundles_post_ra>
// kernel: tpu_custom_call.1
= control target key start
LH: loop header
LB: loop body
LE: loop exit
PB: predicated region body
PF: predicated region fallthrough
CT: control target
= control target key end

     0   :  { %6 = vsyncpa [#allocation3], 0  ;;  %s118_s0 = inlined_call_operand.hbm [shape: f32[8,128], index: 0, kind: input, shape index: {}]   ;;  %s119_s1 = inlined_call_operand.hbm [shape: f32[8,128], index: 1, kind: output, shape index: {}]  }
   0x1   :  { %7 = vsyncpa [#allocation4], 0  ;;  %s13_s8 = sshll.u32 %s118_s0, 4  ;;  %s99_s9 = smov [#allocation2]   ;;  %s14_s8 = int_to_ptr.hbm [resolvable:$true] %s13_s8 }
   0x2   :  { %s15_s10 = sshll.u32 %s99_s9, 4  ;;  %s16_s10 = int_to_ptr.vmem [resolvable:$true] %s15_s10 }
   0x3   :  { %18 = dma.hbm_to_vmem [thread:$0]  %s14_s8, 128, %s16_s10, [#allocation3]  }
   0x4   :  { %95 = dma.done.wait [#allocation3], 128  }
   0x5   :  { %96 = vsyncadd [#allocation3], 4294967168  ;;  %v23_v0 = vld [vmem:[#allocation2] sm:$0xff]  ;;  %s100_s11 = smov 1   ;;  %s101_s12 = smov [#allocation5]  }
   0x6   :  { %24 = vrot.lane.b32.xlu0 %v23_v0, %s100_s11  ;;  %s32_s13 = sshll.u32 %s101_s12, 4  ;;  %s34_s16 = sshll.u32 %s119_s1, 4  ;;  %s33_s13 = int_to_ptr.vmem [resolvable:$true] %s32_s13  ;;  %s35_s16 = int_to_ptr.hbm [resolvable:$true] %s34_s16 }
  0x78   :  { %v25_v1 = vpop.permute.xlu0 %24 }
  0x79   :  { %26 = vst [vmem:[#allocation5] sm:$0xff] %v25_v1 }
  0x7a   :  { %37 = dma.vmem_to_hbm [thread:$0]  %s33_s13, 128, %s35_s16, [#allocation4]  }
  0x7b   :  { %97 = dma.done.wait [#allocation4], 128  }
  0x7c   :  { %98 = vsyncadd [#allocation4], 4294967168 }
  0x7d   :  { %42 = vsyncpa [#allocation3], 1 }
  0x7e   :  { %43 = vsyncpa [#allocation4], 1 }

</bundles_post_ra>
